<compile_context>
chip_gen: v7x
topology: tpu7x:2x2x1
jax: 0.10.0
libtpu: 0.0.40
codegen_flags: <defaults>
</compile_context>

<pallas_src>
import functools
import math

import jax
import jax.numpy as jnp
from jax import lax
from jax.experimental import pallas as pl
from jax.experimental.pallas import tpu as pltpu


def _rmsnorm_kernel(*refs, scale, eps, packed):
    if packed:
        x_ref, g_ref, seg_ref, o_ref = refs
    else:
        x_ref, g_ref, o_ref = refs

    x = x_ref[0]                           # (TS, W), input dtype
    g = g_ref[0].astype(jnp.float32)       # (1, W)
    xf = x.astype(jnp.float32)             # f32 accumulation for the norm
    sq = xf * xf

    if packed:
        # Segmented lane reduction + broadcast in one MXU matmul:
        # seg[i, j] = 1 if lanes i, j belong to the same original D-row.
        # seg dtype matches the input class: bf16 operands for bf16 inputs
        # (single MXU pass, exact 0/1 entries), f32 operands for f32 inputs.
        lhs = sq.astype(seg_ref.dtype)
        sumsq = jnp.dot(lhs, seg_ref[...],
                        preferred_element_type=jnp.float32)       # (TS, W)
    else:
        sumsq = jnp.sum(sq, axis=-1, keepdims=True)               # (TS, 1)

    # F.normalize clamp: x / max(||x||, eps) == x * rsqrt(max(sumsq, eps^2)).
    # rsqrt runs on the EUP (own VLIW slot) instead of a VPU divide.
    r = scale * lax.rsqrt(jnp.maximum(sumsq, eps * eps))

    # Single f32 elementwise path; one rounding at the store.
    o_ref[0] = (xf * (r * g)).astype(o_ref.dtype)


def _vmem_budget_bytes():
    """Scoped-VMEM budget derived from the chip (fallback safe for v7x)."""
    try:
        cap = int(pltpu.get_tpu_info().vmem_capacity_bytes)
    except Exception:
        cap = 64 * 1024 * 1024            # v7x-safe fallback
    return min((cap * 3) // 4, 96 * 1024 * 1024)


def rmsnorm(x, gamma, *, eps=1e-12, tile_bytes=None, max_tile_rows=8192):
    """x: (B, H, S, D), gamma: (H, 1, D) -> (B, H, S, D)."""
    B, H, S, D = x.shape
    assert gamma.shape == (H, 1, D)
    scale = float(D) ** 0.5

    vmem_budget = _vmem_budget_bytes()
    if tile_bytes is None:
        # Multi-MiB x tiles; ~4 MiB on v7x (48 MiB budget), ~8 MiB on v5e/v6e.
        tile_bytes = min(8 * 1024 * 1024, vmem_budget // 12)

    # ---- lane-dense packing: fold k rows into the lane axis so the last dim
    # is a multiple of 128 (unmasked vld/vst). Pure contiguous reshape.
    k = 1
    if D % 128 != 0:
        kk = 128 // math.gcd(D, 128)
        if S % kk == 0 and kk * D <= 512:   # keep the seg matrix small
            k = kk
    packed = k > 1
    W = k * D
    Sp = S // k
    BH = B * H
    xp = x.reshape(BH, Sp, W)
    gp = jnp.tile(gamma, (1, 1, k))         # (H, 1, W)

    # ---- tile the (packed) sequence axis. Per-row VMEM footprint:
    # x + out double-buffered in the I/O dtype (4x) plus ~5 tile-sized f32
    # temporaries in the kernel body (xf, sq, lhs, sumsq/r*g, y).
    itemsize = jnp.dtype(x.dtype).itemsize
    per_row = W * (4 * itemsize + 5 * 4)
    ts_vmem = max(1, vmem_budget // per_row)
    ts_target = max(1, tile_bytes // (W * itemsize))
    ts = max(1, min(max_tile_rows, ts_vmem, ts_target, Sp))
    if ts < Sp:
        ts = max(16, (ts // 16) * 16)        # sublane-aligned for f32 and bf16
    n_s = pl.cdiv(Sp, ts)

    kernel = functools.partial(_rmsnorm_kernel, scale=scale, eps=eps,
                               packed=packed)

    # Grid (B*H, S_tiles): both axes parallel; gamma block is tiny (1, W) so
    # re-fetching it per step is negligible and fully pipelined.
    in_specs = [
        pl.BlockSpec((1, ts, W), lambda i, s: (i, s, 0)),
        pl.BlockSpec((1, 1, W), lambda i, s: (i % H, 0, 0)),
    ]
    args = [xp, gp]
    seg_nbytes = 0
    if packed:
        seg_dtype = jnp.bfloat16 if x.dtype == jnp.bfloat16 else jnp.float32
        lane_seg = jnp.arange(W, dtype=jnp.int32) // D
        seg = (lane_seg[:, None] == lane_seg[None, :]).astype(seg_dtype)
        in_specs.append(pl.BlockSpec((W, W), lambda i, s: (0, 0)))
        args.append(seg)
        seg_nbytes = seg.size * jnp.dtype(seg_dtype).itemsize

    # Advisory cost estimate (scheduling hint for surrounding XLA ops).
    n_rows = B * H * S
    n_elem = n_rows * D
    reduce_flops = 2 * BH * Sp * W * W if packed else 2 * n_elem
    cost = pl.CostEstimate(
        flops=int(3 * n_elem + reduce_flops),
        transcendentals=int(n_rows),
        bytes_accessed=int(2 * x.size * itemsize + gp.size * itemsize
                           + seg_nbytes),
    )

    out = pl.pallas_call(
        kernel,
        out_shape=jax.ShapeDtypeStruct((BH, Sp, W), x.dtype),
        grid_spec=pltpu.PrefetchScalarGridSpec(
            num_scalar_prefetch=0,
            grid=(BH, n_s),
            in_specs=in_specs,
            out_specs=pl.BlockSpec((1, ts, W), lambda i, s: (i, s, 0)),
        ),
        compiler_params=pltpu.CompilerParams(
            dimension_semantics=("parallel", "parallel"),
            vmem_limit_bytes=int(vmem_budget),
        ),
        cost_estimate=cost,
    )(*args)

    return out.reshape(B, H, S, D)


def rmsnorm_reference(x, gamma, *, eps=1e-12):
    """Pure-JAX reference matching the PyTorch module semantics."""
    D = x.shape[-1]
    scale = float(D) ** 0.5
    norm = jnp.sqrt(jnp.sum(x.astype(jnp.float32) ** 2, axis=-1, keepdims=True))
    normed = x.astype(jnp.float32) / jnp.maximum(norm, eps)
    return (normed * scale * gamma[None, ...].astype(jnp.float32)).astype(x.dtype)


if __name__ == "__main__":
    key = jax.random.PRNGKey(0)

    # Case 1: small per-head dim (D=32) -> lane-packing path (k=4, W=128).
    B, H, S, D = 2, 4, 8, 32
    k1, k2, key = jax.random.split(key, 3)
    x = jax.random.normal(k1, (B, H, S, D), dtype=jnp.float32)
    gamma = 1.0 + 0.1 * jax.random.normal(k2, (H, 1, D), dtype=jnp.float32)
    out = jax.block_until_ready(rmsnorm(x, gamma))
    ref = rmsnorm_reference(x, gamma)
    assert out.shape == (B, H, S, D)
    assert jnp.allclose(out, ref, atol=1e-5, rtol=1e-5), "f32 packed mismatch"

    # Case 2: lane-dense dim (D=128) -> plain per-row VPU reduce path.
    B2, H2, S2, D2 = 2, 2, 16, 128
    k1, k2, key = jax.random.split(key, 3)
    x2 = jax.random.normal(k1, (B2, H2, S2, D2), dtype=jnp.float32)
    g2 = 1.0 + 0.1 * jax.random.normal(k2, (H2, 1, D2), dtype=jnp.float32)
    out2 = jax.block_until_ready(rmsnorm(x2, g2))
    ref2 = rmsnorm_reference(x2, g2)
    assert jnp.allclose(out2, ref2, atol=1e-5, rtol=1e-5), "f32 unpacked mismatch"

    # Case 3: bf16 inputs (D=64 -> k=2, W=128) -> bf16-operand seg matmul,
    # f32 accumulation + single f32 elementwise path.
    B3, H3, S3, D3 = 2, 4, 32, 64
    k1, k2, key = jax.random.split(key, 3)
    x3 = jax.random.normal(k1, (B3, H3, S3, D3), dtype=jnp.float32).astype(jnp.bfloat16)
    g3 = (1.0 + 0.1 * jax.random.normal(k2, (H3, 1, D3), dtype=jnp.float32)).astype(jnp.bfloat16)
    out3 = jax.block_until_ready(rmsnorm(x3, g3))
    ref3 = rmsnorm_reference(x3, g3)
    assert jnp.allclose(out3.astype(jnp.float32), ref3.astype(jnp.float32),
                        atol=3e-2, rtol=3e-2), "bf16 mismatch"

    # Case 4: D=96 (not a divisor of 128) -> generalized packing k=4, W=384.
    B4, H4, S4, D4 = 1, 2, 8, 96
    k1, k2, key = jax.random.split(key, 3)
    x4 = jax.random.normal(k1, (B4, H4, S4, D4), dtype=jnp.float32)
    g4 = 1.0 + 0.1 * jax.random.normal(k2, (H4, 1, D4), dtype=jnp.float32)
    out4 = jax.block_until_ready(rmsnorm(x4, g4))
    ref4 = rmsnorm_reference(x4, g4)
    assert jnp.allclose(out4, ref4, atol=1e-5, rtol=1e-5), "f32 D=96 mismatch"

    print("KERNEL_OK")
</pallas_src>

<mosaic_0001>
module attributes {stable_mosaic.version = 11 : i64} {
  func.func @_rmsnorm_kernel(%arg0: i32, %arg1: i32, %arg2: memref<1x2x128xf32, #tpu.memory_space<vmem>>, %arg3: memref<1x1x128xf32, #tpu.memory_space<vmem>>, %arg4: memref<128x128xf32, #tpu.memory_space<vmem>>, %arg5: memref<1x2x128xf32, #tpu.memory_space<vmem>>) attributes {dimension_semantics = [#tpu.dimension_semantics<parallel>, #tpu.dimension_semantics<parallel>], iteration_bounds = array<i64: 8, 1>, scalar_prefetch = 0 : i64, scratch_operands = 0 : i64, tpu.core_type = #tpu.core_type<tc>, window_params = [{transform_indices = @transform_0, window_bounds = array<i64: 1, 2, 128>}, {transform_indices = @transform_1, window_bounds = array<i64: 1, 1, 128>}, {pipeline_mode = #tpu.pipeline_mode<synchronous>, transform_indices = @transform_2, window_bounds = array<i64: 128, 128>}, {transform_indices = @transform_3, window_bounds = array<i64: 1, 2, 128>}]} {
    %c0 = arith.constant 0 : index
    %c0_0 = arith.constant 0 : index
    %c0_1 = arith.constant 0 : index
    %0 = vector.load %arg2[%c0, %c0_0, %c0_1] : memref<1x2x128xf32, #tpu.memory_space<vmem>>, vector<1x2x128xf32>
    %1 = vector.shape_cast %0 : vector<1x2x128xf32> to vector<2x128xf32>
    %c0_2 = arith.constant 0 : index
    %c0_3 = arith.constant 0 : index
    %c0_4 = arith.constant 0 : index
    %2 = vector.load %arg3[%c0_2, %c0_3, %c0_4] : memref<1x1x128xf32, #tpu.memory_space<vmem>>, vector<1x1x128xf32>
    %3 = vector.shape_cast %2 : vector<1x1x128xf32> to vector<1x128xf32>
    %4 = arith.mulf %1, %1 : vector<2x128xf32>
    %c0_5 = arith.constant 0 : index
    %c0_6 = arith.constant 0 : index
    %5 = vector.load %arg4[%c0_5, %c0_6] : memref<128x128xf32, #tpu.memory_space<vmem>>, vector<128x128xf32>
    %cst = arith.constant dense<0.000000e+00> : vector<2x128xf32>
    %6 = tpu.matmul %4, %5, %cst {dimension_numbers = #tpu.dot_dimension_numbers<[1], [0], [0], [1], [0, 0, 1, 1], [], []>} : vector<2x128xf32>, vector<128x128xf32>, vector<2x128xf32> -> vector<2x128xf32>
    %cst_7 = arith.constant 1.000000e-24 : f32
    %7 = vector.broadcast %cst_7 : f32 to vector<2x128xf32>
    %8 = arith.maximumf %6, %7 : vector<2x128xf32>
    %9 = math.rsqrt %8 : vector<2x128xf32>
    %cst_8 = arith.constant 5.65685415 : f32
    %10 = vector.broadcast %cst_8 : f32 to vector<2x128xf32>
    %11 = arith.mulf %10, %9 : vector<2x128xf32>
    %12 = vector.broadcast %3 : vector<1x128xf32> to vector<2x128xf32>
    %13 = arith.mulf %11, %12 : vector<2x128xf32>
    %14 = arith.mulf %1, %13 : vector<2x128xf32>
    %c0_9 = arith.constant 0 : index
    %c0_10 = arith.constant 0 : index
    %c0_11 = arith.constant 0 : index
    %15 = vector.load %arg5[%c0_9, %c0_10, %c0_11] : memref<1x2x128xf32, #tpu.memory_space<vmem>>, vector<1x2x128xf32>
    %16 = vector.shape_cast %15 : vector<1x2x128xf32> to vector<2x128xf32>
    %17 = vector.shape_cast %14 : vector<2x128xf32> to vector<1x2x128xf32>
    tpu.vector_store %arg5[%c0_9, %c0_10, %c0_11], %17 {strides = array<i32>} : memref<1x2x128xf32, #tpu.memory_space<vmem>>, vector<1x2x128xf32>,
    return
  }
  func.func @transform_0(%arg0: i32, %arg1: i32) -> (i32, i32, i32) {
    %c0_i32 = arith.constant 0 : i32
    %c0_i32_0 = arith.constant 0 : i32
    return %arg0, %arg1, %c0_i32 : i32, i32, i32
  }
  func.func @transform_1(%arg0: i32, %arg1: i32) -> (i32, i32, i32) {
    %c4_i32 = arith.constant 4 : i32
    %c0_i32 = arith.constant 0 : i32
    %0 = arith.cmpi eq, %c4_i32, %c0_i32 : i32
    %c1_i32 = arith.constant 1 : i32
    %1 = arith.select %0, %c1_i32, %c4_i32 : i32
    %2 = arith.remsi %arg0, %1 : i32
    %c0_i32_0 = arith.constant 0 : i32
    %3 = arith.cmpi ne, %2, %c0_i32_0 : i32
    %c0_i32_1 = arith.constant 0 : i32
    %4 = arith.cmpi slt, %2, %c0_i32_1 : i32
    %c0_i32_2 = arith.constant 0 : i32
    %5 = arith.cmpi slt, %1, %c0_i32_2 : i32
    %6 = arith.xori %4, %5 : i1
    %7 = arith.andi %6, %3 : i1
    %8 = arith.addi %2, %1 : i32
    %9 = arith.select %7, %8, %2 : i32
    %c0_i32_3 = arith.constant 0 : i32
    %c0_i32_4 = arith.constant 0 : i32
    %c0_i32_5 = arith.constant 0 : i32
    return %9, %c0_i32_3, %c0_i32_4 : i32, i32, i32
  }
  func.func @transform_2(%arg0: i32, %arg1: i32) -> (i32, i32) {
    %c0_i32 = arith.constant 0 : i32
    %c0_i32_0 = arith.constant 0 : i32
    %c0_i32_1 = arith.constant 0 : i32
    return %c0_i32, %c0_i32_0 : i32, i32
  }
  func.func @transform_3(%arg0: i32, %arg1: i32) -> (i32, i32, i32) {
    %c0_i32 = arith.constant 0 : i32
    %c0_i32_0 = arith.constant 0 : i32
    return %arg0, %arg1, %c0_i32 : i32, i32, i32
  }
}

</mosaic_0001>

<bundles_post_ra>
// kernel: tpu_custom_call.1
= control target key start
LH: loop header
LB: loop body
LE: loop exit
PB: predicated region body
PF: predicated region fallthrough
CT: control target
= control target key end

     0   :  { %s1278_s0 = inlined_call_operand.hbm [shape: f32[8,2,128], index: 0, kind: input, shape index: {}]   ;;  %s1279_s1 = inlined_call_operand.hbm [shape: f32[4,1,128], index: 1, kind: input, shape index: {}]   ;;  %s1280_s2 = inlined_call_operand.hbm [shape: f32[128,128], index: 2, kind: input, shape index: {}]   ;;  %s1281_s3 = inlined_call_operand.hbm [shape: f32[8,2,128], index: 3, kind: output, shape index: {}]  }
   0x1   :  { %1288 = sst [smem:[#allocation13_spill]] %s1278_s0 }
   0x2   :  { %1289 = sst [smem:[#allocation14_spill]] %s1280_s2 }
   0x3   :  { %8 = vsyncpa [#allocation3], 0 }
   0x4   :  { %10 = vsyncpa [#allocation3 + $0x1], 0 }
   0x5   :  { %11 = vsyncpa [#allocation6], 0 }
   0x6   :  { %13 = vsyncpa [#allocation6 + $0x1], 0 }
   0x7   :  { %14 = vsyncpa [#allocation4], 0 }
   0x8   :  { %16 = vsyncpa [#allocation4 + $0x1], 0  ;;  %s968_s12 = smov 0   ;;  %s970_s13 = smov 0  }
   0x9   :  { %s972_s14 = smov 0   ;;  %s974_s15 = smov 0  }
   0xa   :  { %s976_s16 = smov 0   ;;  %s978_s17 = smov 0  }
   0xb   :  { %s980_s18 = smov 0   ;;  %s982_s19 = smov 0  }
   0xc   :  { %s984_s20 = smov 0  }
   0xd LB: > { %s1014_s21 = sadd.s32 4294967295, %s937_s20   ;;  %p532_p0 = scmp.ge.s32.totalorder %s937_s20, 1  ;;  %s937_s20 = sphi %s984_s20, %s22_s20   ;;  %s933_s19 = sphi %s982_s19, %s1318_s19   ;;  %s929_s18 = sphi %s980_s18, %s1317_s18   ;;  %s925_s17 = sphi %s978_s17, %s1316_s17   ;;  %s921_s16 = sphi %s976_s16, %s1315_s16   ;;  %s917_s15 = sphi %s974_s15, %s1314_s15   ;;  %s913_s14 = sphi %s972_s14, %s1313_s14   ;;  %s909_s13 = sphi %s970_s13, %s1312_s13   ;;  %s905_s12 = sphi %s968_s12, %s1311_s12  }
   0xe   : > { %p1282_p1 = scmp.eq.s32.totalorder %s1014_s21, 0  ;;  %p166_p2 = scmp.lt.s32.totalorder %s937_s20, 9 }
   0xf   : > { %s939_s23 = smov [#allocation7]   ;;  %s1292_s2 = sld [smem:[#allocation14_spill]] }
  0x10   : > { %p1019_p3 = pnand %p532_p0, %p166_p2  ;;  %s178_s24 = sshll.u32 %s939_s23, 4  ;;  %s179_s24 = int_to_ptr.vmem [resolvable:$true] %s178_s24 }
  0x12   : > { %s1290_s22 = scalar_select %p1019_p3, 1, 0 }
  0x13   : > { %p636_p4 = pneg %p1019_p3 }
  0x15   : > { %p1027_p5 = pnand %p636_p4, %p1282_p1  ;;  %s735_s28 = scalar_lea.hbm %s1292_s2, 2048 }
  0x16   : > { %p736_p6 = scmp.ne.s32.totalorder %s1292_s2, %s735_s28  ;;  %p742_p10 = scmp.lt.u32.totalorder %s735_s28, %s1292_s2 }
  0x17   : > { %p737_p7 = pneg %p1027_p5 }
  0x19   : > { %p738_p8 = pnand %p737_p7, %p736_p6 }
  0x1b   : > { %p739_p9 = pneg %p738_p8 }
  0x1d   : > { %p744_p11 = pnand %p742_p10, %p739_p9 }
  0x1f   : > { %747 = shalt.err (!%p744_p11)
}
  0x20   : > { %s748_s6 = scalar_lea.vmem %s179_s24, 2048  ;;  %p756_p2 = scmp.lt.s32.totalorder %s179_s24, %s179_s24 }
  0x21   : > { %p749_p12 = scmp.ne.s32.totalorder %s179_s24, %s748_s6  ;;  %p757_p4 = scmp.lt.s32.totalorder %s748_s6, %s748_s6 }
  0x23   : > { %p751_p13 = pnand %p749_p12, %p737_p7  ;;  %p758_p1 = por %p757_p4, %p756_p2 }
  0x25   : > { %p752_p0 = pneg %p751_p13 }
  0x27   : > { %p759_p3 = pnand %p758_p1, %p752_p0 }
  0x29   : > { %762 = shalt.err (!%p759_p3)
}
  0x2a   : > { %s940_s7 = smov 128   ;;  %s941_s8 = smov 8  }
  0x2b   : > { %639 = dma.hbm_to_vmem [thread:$0]  (!%p1027_p5), %s1292_s2, 2048, %s179_s24, [#allocation6], %s940_s7, %s940_s7, %s941_s8  }
  0x2c   : > { %s525_s11 = sadd.s32 4294967294, %s937_s20   ;;  %s34_s23 = sadd.s32 1, %s933_s19 }
  0x2d   : > { %s43_s26 = sadd.s32 1, %s925_s17  ;;  %p36_p1 = scmp.ge.s32.totalorder %s34_s23, 8 }
  0x2e   : > { %p50_p3 = scmp.ne.s32.totalorder %s925_s17, %s921_s16  ;;  %p1285_p6 = scmp.eq.s32.totalorder %s937_s20, 0 }
  0x2f   : > { %p56_p7 = scmp.ne.s32.totalorder %s921_s16, %s917_s15  ;;  %s1320_s23 = smov (%p36_p1, %s34_s23), 0 }
  0x30   : > { %p1059_p8 = por %p1285_p6, %p50_p3  ;;  %p1294_p5 = scmp.eq.s32.totalorder %s1014_s21, 0 }
  0x31   : > { %s38_s27 = ssub.s32 %s933_s19, %s1320_s23  ;;  %p153_p10 = scmp.eq.s32.totalorder %s1014_s21, 7 }
  0x32   : > { %p1065_p9 = por %p1294_p5, %p56_p7  ;;  %p41_p11 = scmp.eq.s32.totalorder %s38_s27, 0 }
  0x33   : > { %p159_p12 = scmp.eq.s32.totalorder %s525_s11, 7  ;;  %p1072_p13 = por %p153_p10, %p50_p3 }
  0x34   : > { %p1284_p0 = scmp.lt.s32.totalorder %s937_s20, 8  ;;  %s192_s4 = sand.u32 1, %s925_s17  }
  0x35   : > { %s1296_s28 = scalar_select %p1072_p13, 1, 0 }
  0x36   : > { %s1078_s29 = scalar_select %p41_p11, %s925_s17, %s43_s26  }
  0x37   : > { %p1080_p2 = por %p159_p12, %p56_p7  ;;  %s535_s5 = sshll.u32 %s192_s4, 1 }
  0x38   : > { %s536_s6 = sshll.u32 %s933_s19, 5  ;;  %s1298_s0 = sld [smem:[#allocation13_spill]] }
  0x39   : > { %s1297_s30 = scalar_select %p1080_p2, 1, 0 }
  0x3a   : > { %s196_s10 = scalar_lea.vmem [#allocation2], %s535_s5  ;;  %p1097_p4 = pnand %p1284_p0, %p1059_p8 }
  0x3b   : > { %s204_s11 = sshll.u32 %s196_s10, 4  ;;  %s193_s27 = scalar_lea.sflag [#allocation3], %s192_s4  ;;  %s1091_s11 = int_to_ptr.vmem [resolvable:$true] %s204_s11 }
  0x3c   : > { %p765_p3 = pneg %p1097_p4 }
  0x3e   : > { %s1089_s9 = scalar_lea.hbm %s1298_s0, %s536_s6  ;;  %s768_s25 = scalar_lea.hbm %s1298_s0, 256 }
  0x3f   : > { %s763_s7 = scalar_lea.hbm %s1089_s9, 32  ;;  %p769_p8 = scmp.lt.u32.totalorder %s1089_s9, %s1298_s0 }
  0x40   : > { %p764_p1 = scmp.ne.s32.totalorder %s1089_s9, %s763_s7  ;;  %p770_p10 = scmp.lt.u32.totalorder %s768_s25, %s763_s7 }
  0x41   : > { %p772_p12 = scmp.lt.u32.totalorder %s763_s7, %s1089_s9 }
  0x42   : > { %p766_p7 = pnand %p765_p3, %p764_p1  ;;  %p771_p11 = por %p770_p10, %p769_p8 }
  0x44   : > { %p767_p5 = pneg %p766_p7  ;;  %p773_p0 = por %p772_p12, %p771_p11 }
  0x46   : > { %p774_p6 = pnand %p773_p0, %p767_p5 }
  0x48   : > { %777 = shalt.err (!%p774_p6)
}
  0x49   : > { %s778_s4 = scalar_lea.vmem %s1091_s11, 32  ;;  %s942_s5 = smov [#allocation2]  }
  0x4a   : > { %p779_p1 = scmp.ne.s32.totalorder %s1091_s11, %s778_s4  ;;  %s783_s6 = sshll.u32 %s942_s5, 4  ;;  %s784_s6 = int_to_ptr.vmem [resolvable:$false] %s783_s6 }
  0x4b   : > { %s785_s8 = scalar_lea.vmem %s784_s6, 64  ;;  %p786_p13 = scmp.lt.s32.totalorder %s1091_s11, %s784_s6 }
  0x4c   : > { %p781_p7 = pnand %p779_p1, %p765_p3  ;;  %p787_p8 = scmp.lt.s32.totalorder %s785_s8, %s778_s4 }
  0x4e   : > { %p782_p2 = pneg %p781_p7  ;;  %p788_p10 = por %p787_p8, %p786_p13 }
  0x50   : > { %p789_p11 = pnand %p788_p10, %p782_p2 }
  0x52   : > { %792 = shalt.err (!%p789_p11)
}
  0x53   : > { %643 = dma.hbm_to_vmem [thread:$0]  (!%p1097_p4), %s1089_s9, 32, %s1091_s11, %s193_s27  }
  0x54   : > { %s67_s7 = ssub.s32 0, %s933_s19  ;;  %s79_s10 = ssub.s32 0, %s1320_s23 }
  0x55   : > { %s526_s25 = smin.u32 %s933_s19, %s67_s7  ;;  %s529_s26 = smin.u32 %s79_s10, %s1320_s23 }
  0x56   : > { %s69_s4 = sand.u32 3, %s526_s25   ;;  %s81_s5 = sand.u32 3, %s529_s26  }
  0x57   : > { %s93_s6 = sadd.s32 1, %s913_s14  ;;  %p528_p6 = scmp.lt.s32.totalorder %s69_s4, 0 }
  0x58   : > { %s76_s8 = sadd.s32 4, %s69_s4  ;;  %p531_p13 = scmp.lt.s32.totalorder %s81_s5, 0 }
  0x59   : > { %s1322_s8 = smov (!%p528_p6, %s76_s8), %s69_s4  ;;  %s88_s0 = sadd.s32 4, %s81_s5 }
  0x5a   : > { %p100_p0 = scmp.ne.s32.totalorder %s913_s14, %s909_s13  ;;  %p106_p2 = scmp.ne.s32.totalorder %s909_s13, %s905_s12 }
  0x5b   : > { %s1324_s0 = smov (!%p531_p13, %s88_s0), %s81_s5  ;;  %p1300_p4 = scmp.eq.s32.totalorder %s937_s20, 0 }
  0x5c   : > { %p1301_p5 = scmp.eq.s32.totalorder %s1014_s21, 0  ;;  %s90_s11 = ssub.s32 %s1322_s8, %s1324_s0 }
  0x5d   : > { %p102_p3 = por %p100_p0, %p1300_p4  ;;  %s211_s27 = sand.u32 1, %s937_s20  }
  0x5e   : > { %p1139_p12 = por %p106_p2, %p1301_p5  ;;  %p91_p1 = scmp.eq.s32.totalorder %s90_s11, 0 }
  0x5f   : > { %s213_s7 = sand.u32 1, %s913_s14   ;;  %s540_s25 = sshll.u32 %s1322_s8, 4 }
  0x60   : > { %s1302_s9 = scalar_select %p1139_p12, 1, 0 }
  0x61   : > { %s1146_s10 = scalar_select %p91_p1, %s913_s14, %s93_s6  }
  0x62   : > { %s1151_s2 = scalar_lea.hbm %s1279_s1, %s540_s25  ;;  %s214_s12 = scalar_lea.vmem [#allocation5], %s213_s7 }
  0x63   : > { %s233_s5 = sshll.u32 %s214_s12, 4  ;;  %p1303_p7 = scmp.lt.s32.totalorder %s937_s20, 8  ;;  %s1159_s5 = int_to_ptr.vmem [resolvable:$true] %s233_s5 }
  0x64   : > { %s212_s6 = scalar_lea.sflag [#allocation6], %s211_s27  ;;  %s793_s8 = scalar_lea.hbm %s1151_s2, 16 }
  0x65   : > { %p1155_p8 = pnand %p1303_p7, %p102_p3  ;;  %p794_p10 = scmp.ne.s32.totalorder %s1151_s2, %s793_s8 }
  0x66   : > { %s798_s25 = scalar_lea.hbm %s1279_s1, 64  ;;  %p799_p0 = scmp.lt.u32.totalorder %s1151_s2, %s1279_s1 }
  0x67   : > { %p795_p11 = pneg %p1155_p8  ;;  %p800_p2 = scmp.lt.u32.totalorder %s798_s25, %s793_s8 }
  0x68   : > { %p802_p3 = scmp.lt.u32.totalorder %s793_s8, %s1151_s2 }
  0x69   : > { %p796_p6 = pnand %p795_p11, %p794_p10  ;;  %p801_p4 = por %p800_p2, %p799_p0 }
  0x6b   : > { %p797_p13 = pneg %p796_p6  ;;  %p803_p5 = por %p802_p3, %p801_p4 }
  0x6d   : > { %p804_p1 = pnand %p803_p5, %p797_p13 }
  0x6f   : > { %807 = shalt.err (!%p804_p1)
}
  0x70   : > { %s808_s27 = scalar_lea.vmem %s1159_s5, 16  ;;  %s943_s12 = smov [#allocation5]  }
  0x71   : > { %p809_p7 = scmp.ne.s32.totalorder %s1159_s5, %s808_s27  ;;  %s813_s11 = sshll.u32 %s943_s12, 4  ;;  %s814_s11 = int_to_ptr.vmem [resolvable:$false] %s813_s11 }
  0x72   : > { %s815_s7 = scalar_lea.vmem %s814_s11, 32  ;;  %p816_p12 = scmp.lt.s32.totalorder %s1159_s5, %s814_s11 }
  0x73   : > { %p811_p10 = pnand %p809_p7, %p795_p11  ;;  %p817_p0 = scmp.lt.s32.totalorder %s815_s7, %s808_s27 }
  0x75   : > { %p812_p6 = pneg %p811_p10  ;;  %p818_p2 = por %p817_p0, %p816_p12 }
  0x77   : > { %p819_p4 = pnand %p818_p2, %p812_p6 }
  0x79   : > { %822 = shalt.err (!%p819_p4)
}
  0x7a   : > { %646 = dma.hbm_to_vmem [thread:$0]  (!%p1155_p8), %s1151_s2, 16, %s1159_s5, %s212_s6  }
  0x7b   : > { %p1305_p13 = scmp.ne.s32.totalorder %s1290_s22, 0 }
  0x7c   : > { %s1189_s8 = sand.u32 (!%p1305_p13), 1, %s921_s16  }
  0x7d   : > { %242 = sbr.rel (%p1305_p13) target bundleno = 420 (0x1a4), region = 32  ;;  %s542_s25 = sshll.u32 (!%p1305_p13), %s1189_s8, 1 }
  0x7e   : > { %s245_s4 = scalar_lea.sflag (!%p1305_p13), [#allocation3], %s1189_s8  ;;  %s1195_s26 = scalar_lea.vmem (!%p1305_p13), [#allocation2], %s542_s25 }
  0x84   : > { %888 = dma.done.wait (%p1065_p9), %s245_s4, 32  }
  0x85   : > { %890 = vsyncadd (%p1065_p9), %s245_s4, 4294967264  ;;  %s253_s2 = sand.u32 1, %s1014_s21   ;;  %s255_s22 = sand.u32 1, %s909_s13  }
  0x86   : > { %s254_s5 = scalar_lea.sflag [#allocation6], %s253_s2  ;;  %s1203_s0 = scalar_lea.vmem [#allocation5], %s255_s22 }
  0x87   : > { %p1306_p12 = scmp.ne.s32.totalorder %s1302_s9, 0 }
  0x89   : > { %892 = dma.done.wait (%p1306_p12), %s254_s5, 16  }
  0x8a   : > { %894 = vsyncadd (%p1306_p12), %s254_s5, 4294967280  ;;  %p1307_p8 = scmp.eq.s32.totalorder %s1014_s21, 0 }
  0x8c   : > { %896 = dma.done.wait (%p1307_p8), [#allocation6], 2048   ;;  %p1308_p11 = pmov %p1307_p8 }
  0x8d   : > { %v944_v0 = vmov 0.0|0.0   ;;  %vm945_vm0 = vmmov 0   ;;  %v946_v1 = vmov 0.0   ;;  %v302_v2 = vld [vmem:[#allocation7] sm:$0xff]  ;;  %v303_v3 = vld [vmem:[#allocation7 + $0x8] sm:$0xff]  ;;  %v304_v4 = vld [vmem:[#allocation7 + $0x10] sm:$0xff] }
  0x8e   : > { %898 = vsyncadd (%p1308_p11), [#allocation6], 4294965248  ;;  %602 = vmatprep.subr.bf16.mxu0 %v944_v0  ;;  %599 = vmatprep.mubr.msk.f32.mxu0 %vm945_vm0, %v946_v1  ;;  %v603_v5 = vpack.c.bf16 %v303_v3, %v302_v2  ;;  %v305_v6 = vld [vmem:[#allocation7 + $0x18] sm:$0xff]  ;;  %v306_v8 = vld [vmem:[#allocation7 + $0x20] sm:$0xff]  ;;  %s547_s21 = sshll.u32 %s929_s18, 5  ;;  %s286_s24 = scalar_lea.vmem [#allocation8], %s542_s25 }
  0x8f   : > { %v606_v7 = vpack.c.bf16 %v305_v6, %v304_v4  ;;  %v307_v9 = vld [vmem:[#allocation7 + $0x28] sm:$0xff]  ;;  %v308_v11 = vld [vmem:[#allocation7 + $0x30] sm:$0xff]  ;;  %v309_v12 = vld [vmem:[#allocation7 + $0x38] sm:$0xff]  ;;  %s415_s9 = sshll.u32 %s286_s24, 4  ;;  %s1221_s12 = scalar_lea.hbm %s1281_s3, %s547_s21  ;;  %s1223_s9 = int_to_ptr.vmem [resolvable:$true] %s415_s9 }
  0x90   : > { %604 = vmatpush3.bf16.msra.mxu0 %v603_v5  ;;  %v609_v10 = vpack.c.bf16 %v307_v9, %v306_v8  ;;  %v612_v13 = vpack.c.bf16 %v309_v12, %v308_v11  ;;  %v310_v14 = vld [vmem:[#allocation7 + $0x40] sm:$0xff]  ;;  %v311_v15 = vld [vmem:[#allocation7 + $0x48] sm:$0xff]  ;;  %v312_v17 = vld [vmem:[#allocation7 + $0x50] sm:$0xff]  ;;  %s401_s11 = scalar_lea.sflag [#allocation4], %s1189_s8  ;;  %s823_s7 = scalar_lea.vmem %s1223_s9, 32 }
  0x91   : > { %605 = vmatprep.subr.bf16.mxu0 %v944_v0  ;;  %v615_v16 = vpack.c.bf16 %v311_v15, %v310_v14  ;;  %v313_v18 = vld [vmem:[#allocation7 + $0x58] sm:$0xff]  ;;  %v314_v20 = vld [vmem:[#allocation7 + $0x60] sm:$0xff]  ;;  %v315_v21 = vld [vmem:[#allocation7 + $0x68] sm:$0xff]  ;;  %p824_p9 = scmp.ne.s32.totalorder %s1223_s9, %s823_s7  ;;  %p1309_p3 = scmp.ne.s32.totalorder %s1296_s28, 0 }
  0x92   : > { %v618_v19 = vpack.c.bf16 %v313_v18, %v312_v17  ;;  %v621_v22 = vpack.c.bf16 %v315_v21, %v314_v20  ;;  %v316_v23 = vld [vmem:[#allocation7 + $0x70] sm:$0xff]  ;;  %v317_v24 = vld [vmem:[#allocation7 + $0x78] sm:$0xff]  ;;  %s947_s18 = smov [#allocation8]  }
  0x93   : > { %v624_v25 = vpack.c.bf16 %v317_v24, %v316_v23  ;;  %v299_v26 = vld [vmem:[%s1195_s26] sm:$0x3]  ;;  %p825_p5 = pnand %p824_p9, %p1309_p3  ;;  %s827_s25 = sshll.u32 %s947_s18, 4  ;;  %s828_s25 = int_to_ptr.vmem [resolvable:$false] %s827_s25 }
  0x94   : > { %607 = vmatpush3.bf16.msra.mxu0 %v606_v7  ;;  %v301_v27 = vmul.f32 %v299_v26, %v299_v26  ;;  %v545_v32 = vld [vmem:[%s1203_s0] ss:$0 sm:$0xff]  ;;  %s829_s4 = scalar_lea.vmem %s828_s25, 64  ;;  %p830_p7 = scmp.lt.s32.totalorder %s1223_s9, %s828_s25 }
  0x95   : > { %608 = vmatprep.subr.bf16.mxu0 %v944_v0  ;;  %p826_p1 = pneg %p825_p5  ;;  %p831_p10 = scmp.lt.s32.totalorder %s829_s4, %s823_s7 }
  0x97   : > { %p832_p6 = por %p831_p10, %p830_p7 }
  0x98   : > { %610 = vmatpush3.bf16.msra.mxu0 %v609_v10 }
  0x99   : > { %611 = vmatprep.subr.bf16.mxu0 %v944_v0  ;;  %p833_p0 = pnand %p832_p6, %p826_p1 }
  0x9c   : > { %613 = vmatpush3.bf16.msra.mxu0 %v612_v13 }
  0x9d   : > { %614 = vmatprep.subr.bf16.mxu0 %v944_v0 }
  0xa0   : > { %616 = vmatpush3.bf16.msra.mxu0 %v615_v16 }
  0xa1   : > { %617 = vmatprep.subr.bf16.mxu0 %v944_v0 }
  0xa4   : > { %619 = vmatpush3.bf16.msra.mxu0 %v618_v19 }
  0xa5   : > { %620 = vmatprep.subr.bf16.mxu0 %v944_v0 }
  0xa8   : > { %622 = vmatpush3.bf16.msra.mxu0 %v621_v22 }
  0xa9   : > { %623 = vmatprep.subr.bf16.mxu0 %v944_v0 }
  0xac   : > { %625 = vmatpush3.bf16.msra.mxu0 %v624_v25 }
  0xaf   : > { %600 = vmatmul.mubr.f32.vlgmr.msra.gmra.mrb[0].mxu0 %v301_v27 }
 0x182   : > { %v384_v28 = vpop.f32.mrb[0].mxu0 }
 0x183   : > { %v388_v29 = vmax.f32 %v384_v28, 1e-24  ;;  %v601_v30 = vpop.f32.mrb[1].mxu0 }
 0x185   : > { %733 = vrsqrt.f32 %v388_v29 }
 0x18f   : > { %v734_v31 = vpop.eup %733 }
 0x190   : > { %v390_v33 = vmul.f32 5.656854, %v734_v31 }
 0x192   : > { %v397_v34 = vmul.f32 %v545_v32, %v390_v33 }
 0x194   : > { %v398_v35 = vmul.f32 %v397_v34, %v299_v26 }
 0x196   : > { %399 = vst [vmem:[%s286_s24] sm:$0x3] %v398_v35 }
 0x197   : > { %836 = shalt.err (!%p833_p0)
}
 0x198   : > { %s837_s8 = scalar_lea.hbm %s1221_s12, 32  ;;  %s841_s22 = scalar_lea.hbm %s1281_s3, 256 }
 0x199   : > { %p838_p2 = scmp.ne.s32.totalorder %s1221_s12, %s837_s8  ;;  %p842_p12 = scmp.lt.u32.totalorder %s1221_s12, %s1281_s3 }
 0x19a   : > { %p843_p8 = scmp.lt.u32.totalorder %s841_s22, %s837_s8  ;;  %p845_p9 = scmp.lt.u32.totalorder %s837_s8, %s1221_s12 }
 0x19b   : > { %p839_p4 = pnand %p838_p2, %p1309_p3 }
 0x19c   : > { %p844_p11 = por %p843_p8, %p842_p12 }
 0x19d   : > { %p840_p13 = pneg %p839_p4 }
 0x19e   : > { %p846_p5 = por %p845_p9, %p844_p11 }
 0x1a0   : > { %p847_p1 = pnand %p846_p5, %p840_p13 }
 0x1a2   : > { %850 = shalt.err (!%p847_p1)
}
 0x1a3   : > { %634 = dma.vmem_to_hbm [thread:$0]  (%p1309_p3), %s1223_s9, 32, %s1221_s12, %s401_s11  }
 0x1a4 PF: > { %p654_p7 = scmp.ge.s32.totalorder %s937_s20, 2  ;;  %s427_s21 = sand.u32 1, %s917_s15  }
 0x1a5   : > { %p1310_p10 = scmp.ne.s32.totalorder %s1297_s30, 0  ;;  %s428_s24 = scalar_lea.sflag [#allocation4], %s427_s21 }
 0x1a7   : > { %p648_p6 = pnand %p654_p7, %p1310_p10 }
 0x1a9   : > { %900 = dma.done.wait (!%p648_p6), %s428_s24, 32  }
 0x1aa   : > { %902 = vsyncadd (!%p648_p6), %s428_s24, 4294967264  ;;  %s22_s20 = sadd.s32 1, %s937_s20   ;;  %s1311_s12 = smov %s909_s13 }
 0x1ab   : > { %p19_p0 = scmp.ge.s32.totalorder %s22_s20, 10   ;;  %s1312_s13 = smov %s913_s14 }
 0x1ac   : > { %s1313_s14 = smov %s1146_s10  ;;  %s1314_s15 = smov %s921_s16 }
 0x1ad   : > { %s1315_s16 = smov %s925_s17  ;;  %s1316_s17 = smov %s1078_s29 }
 0x1ae   : > { %s1317_s18 = smov %s933_s19  ;;  %s1318_s19 = smov %s1320_s23 }
 0x1af   :  { %21 = sbr.rel (!%p19_p0) target bundleno = 13 (0xd), region = 94 }
 0x1b6   :  { %433 = vsyncpa [#allocation3], 1 }
 0x1b7   :  { %435 = vsyncpa [#allocation3 + $0x1], 1 }
 0x1b8   :  { %436 = vsyncpa [#allocation6], 1 }
 0x1b9   :  { %438 = vsyncpa [#allocation6 + $0x1], 1 }
 0x1ba   :  { %439 = vsyncpa [#allocation4], 1 }
 0x1bb   :  { %441 = vsyncpa [#allocation4 + $0x1], 1 }

</bundles_post_ra>
